<compile_context>
chip_gen: v7x
topology: tpu7x:2x2x1
jax: 0.10.0
libtpu: 0.0.40
codegen_flags: <defaults>
</compile_context>

<pallas_src>
import functools

import jax
import jax.numpy as jnp
from jax.experimental import pallas as pl
from jax.experimental.pallas import tpu as pltpu


def _round_up(x, m):
    return (x + m - 1) // m * m


def _divisor_tile(dim, cap, mult):
    """Largest multiple of `mult` that is <= cap and divides `dim`; else `dim` (full)."""
    t = (cap // mult) * mult
    while t >= mult:
        if dim % t == 0:
            return t
        t -= mult
    return dim


def _vmem_capacity_bytes():
    # v7x: 64 MiB / TensorCore, v5e/v6e: 128 MiB.  Fall back conservatively.
    try:
        return int(pltpu.get_tpu_info().vmem_capacity_bytes)
    except Exception:
        return 64 * 1024 * 1024


def _vmem_limit(per_buffer_bytes, scratch_bytes, capacity):
    # double-buffered in/out blocks + persistent scratch + compiler slack
    need = 2 * per_buffer_bytes + scratch_bytes + (4 << 20)
    return int(min(max(need, 16 << 20), capacity - (8 << 20)))


# ---------------------------------------------------------------------------
# lm_model: token-flattened, (V, M, K)-tiled linear head, f32 accumulator
# ---------------------------------------------------------------------------
def _lm_head_kernel(x_ref, w_ref, b_ref, o_ref, acc_ref):
    # x_ref: (TILE_M, TILE_K) bf16   w_ref: (TILE_K, TILE_V) bf16
    # b_ref: (1, TILE_V) f32         o_ref: (TILE_M, TILE_V) bf16
    k = pl.program_id(2)
    nk = pl.num_programs(2)

    @pl.when(k == 0)
    def _():
        acc_ref[...] = jnp.zeros_like(acc_ref)

    acc_ref[...] += jnp.dot(x_ref[...], w_ref[...],
                            preferred_element_type=jnp.float32)

    @pl.when(k == nk - 1)
    def _():
        o_ref[...] = (acc_ref[...] + b_ref[...]).astype(o_ref.dtype)


def _lm_head(x2d, w_lm, b_lm, out_dtype=jnp.bfloat16):
    """(M,H) @ (H,V) + b: K-tiled accumulation, weight slab constant over inner M."""
    M, H = x2d.shape
    V = w_lm.shape[1]
    cap = _vmem_capacity_bytes()
    big = cap >= 96 * 1024 * 1024           # v5e/v6e (128 MiB) vs v7x (64 MiB)

    tile_m = min(512 if big else 256, _round_up(M, 16))
    tile_v = min(1024 if big else 512, _round_up(V, 128))   # lane-dense 128-multiple
    tile_k = _divisor_tile(H, 512, 128)                     # must divide H exactly

    nm = pl.cdiv(M, tile_m)
    nv = pl.cdiv(V, tile_v)
    nk = pl.cdiv(H, tile_k)

    per_buf = (tile_m * tile_k * x2d.dtype.itemsize
               + tile_k * tile_v * w_lm.dtype.itemsize
               + 8 * tile_v * 4
               + tile_m * tile_v * jnp.dtype(out_dtype).itemsize)
    vmem = _vmem_limit(per_buf, tile_m * tile_v * 4, cap)

    grid_spec = pltpu.PrefetchScalarGridSpec(
        num_scalar_prefetch=0,
        # V outermost so W_lm is block-index-constant across the inner M loop.
        grid=(nv, nm, nk),
        in_specs=[
            pl.BlockSpec((tile_m, tile_k), lambda v, m, k: (m, k)),   # x tokens
            pl.BlockSpec((tile_k, tile_v), lambda v, m, k: (k, v)),   # W_lm slab
            pl.BlockSpec((1, tile_v), lambda v, m, k: (0, v)),        # b_lm slab
        ],
        out_specs=pl.BlockSpec((tile_m, tile_v), lambda v, m, k: (m, v)),
        scratch_shapes=[pltpu.VMEM((tile_m, tile_v), jnp.float32)],
    )

    return pl.pallas_call(
        _lm_head_kernel,
        out_shape=jax.ShapeDtypeStruct((M, V), out_dtype),
        grid_spec=grid_spec,
        compiler_params=pltpu.CompilerParams(
            dimension_semantics=("parallel", "parallel", "arbitrary"),
            vmem_limit_bytes=vmem,
        ),
    )(x2d, w_lm, b_lm)


# ---------------------------------------------------------------------------
# emb_model: pooled-sum over S tiles (pool BEFORE matmul), K-tiled over H
# ---------------------------------------------------------------------------
def _emb_kernel(x_ref, w_ref, b_ref, o_ref, xsum_ref, acc_ref, *, inv_seq_len):
    # x_ref: (B, TILE_S, TILE_K) bf16   w_ref: (TILE_K, TILE_E) f32
    # b_ref: (1, TILE_E) f32            o_ref: (B, TILE_E) f32
    k = pl.program_id(1)
    s = pl.program_id(2)
    nk = pl.num_programs(1)
    ns = pl.num_programs(2)

    @pl.when(s == 0)
    def _():
        xsum_ref[...] = jnp.zeros_like(xsum_ref)

    # Pool (sum) over the seq tile before the matmul: S x fewer MXU FLOPs.
    xsum_ref[...] += jnp.sum(x_ref[...].astype(jnp.float32), axis=1)

    @pl.when((s == ns - 1) & (k == 0))
    def _():
        acc_ref[...] = jnp.zeros_like(acc_ref)

    @pl.when(s == ns - 1)
    def _():
        acc_ref[...] += jnp.dot(xsum_ref[...], w_ref[...],
                                preferred_element_type=jnp.float32)

    @pl.when((s == ns - 1) & (k == nk - 1))
    def _():
        o_ref[...] = (acc_ref[...] * inv_seq_len + b_ref[...]).astype(o_ref.dtype)


def _emb_head(x, w_emb, b_emb, out_dtype=jnp.float32):
    B, S, H = x.shape
    E = w_emb.shape[1]
    cap = _vmem_capacity_bytes()

    tile_e = min(256, _round_up(E, 128))    # lane-dense 128-multiple
    tile_k = _divisor_tile(H, 512, 128)     # divides H exactly
    tile_s = _divisor_tile(S, 256, 8)       # divides S exactly (no masked rows in the pooled sum)

    ne = pl.cdiv(E, tile_e)
    nk = pl.cdiv(H, tile_k)
    ns = pl.cdiv(S, tile_s)

    per_buf = (B * tile_s * tile_k * x.dtype.itemsize
               + tile_k * tile_e * 4
               + 8 * tile_e * 4
               + _round_up(B, 8) * tile_e * 4)
    scratch = B * tile_k * 4 + B * tile_e * 4
    vmem = _vmem_limit(per_buf, scratch, cap)

    grid_spec = pltpu.PrefetchScalarGridSpec(
        num_scalar_prefetch=0,
        grid=(ne, nk, ns),
        in_specs=[
            pl.BlockSpec((B, tile_s, tile_k), lambda e, k, s: (0, s, k)),  # activations
            pl.BlockSpec((tile_k, tile_e), lambda e, k, s: (k, e)),        # W_emb slab
            pl.BlockSpec((1, tile_e), lambda e, k, s: (0, e)),             # b_emb slab
        ],
        out_specs=pl.BlockSpec((B, tile_e), lambda e, k, s: (0, e)),
        scratch_shapes=[
            pltpu.VMEM((B, tile_k), jnp.float32),   # pooled sum for the current K chunk
            pltpu.VMEM((B, tile_e), jnp.float32),   # output accumulator over K
        ],
    )

    return pl.pallas_call(
        functools.partial(_emb_kernel, inv_seq_len=1.0 / S),
        out_shape=jax.ShapeDtypeStruct((B, E), out_dtype),
        grid_spec=grid_spec,
        compiler_params=pltpu.CompilerParams(
            dimension_semantics=("parallel", "arbitrary", "arbitrary"),
            vmem_limit_bytes=vmem,
        ),
    )(x, w_emb, b_emb)


# ---------------------------------------------------------------------------
# ModelWrapper.forward equivalent
# ---------------------------------------------------------------------------
def model_wrapper_forward(x, w_lm, b_lm, w_emb, b_emb):
    """Pallas equivalent of ModelWrapper.forward -> (lm_out, emb_out)."""
    B, S, H = x.shape
    V = w_lm.shape[1]

    # Cast the two dominant HBM streams once; both kernels accumulate in f32.
    x_bf16 = x.astype(jnp.bfloat16)
    w_lm_bf16 = w_lm.astype(jnp.bfloat16)

    # lm_model: flatten tokens so M tiles actually fill the MXU.
    lm_out = _lm_head(x_bf16.reshape(B * S, H), w_lm_bf16, b_lm).reshape(B, S, V)

    # emb_model: pooled embedding (tiled over S and H, never a full (B,S,H) block).
    emb_out = _emb_head(x_bf16, w_emb, b_emb)

    # Tuple return: (self.lm_model(**kwargs), self.emb_model(**kwargs))
    return lm_out, emb_out


if __name__ == "__main__":
    B, S, H = 2, 8, 32          # batch, seq, hidden
    V, E = 128, 128             # lm vocab size, embedding dim (lane-aligned)

    key = jax.random.PRNGKey(0)
    kx, k1, k2, k3, k4 = jax.random.split(key, 5)

    x = jax.random.normal(kx, (B, S, H), dtype=jnp.float32)
    w_lm = jax.random.normal(k1, (H, V), dtype=jnp.float32) * 0.02
    b_lm = jax.random.normal(k2, (1, V), dtype=jnp.float32) * 0.02
    w_emb = jax.random.normal(k3, (H, E), dtype=jnp.float32) * 0.02
    b_emb = jax.random.normal(k4, (1, E), dtype=jnp.float32) * 0.02

    lm_out, emb_out = model_wrapper_forward(x, w_lm, b_lm, w_emb, b_emb)
    jax.block_until_ready((lm_out, emb_out))

    # Reference in plain JAX (original module math: pool AFTER the matmul; the
    # kernel pools before and uses bf16 inputs / f32 accumulation — algebraically
    # identical, so compare with bf16-level tolerance on the logits).
    lm_ref = jnp.einsum("bsh,hv->bsv", x, w_lm) + b_lm[0]
    emb_ref = jnp.mean(jnp.einsum("bsh,he->bse", x, w_emb) + b_emb[0], axis=1)

    assert lm_out.shape == (B, S, V) and lm_out.dtype == jnp.bfloat16
    assert emb_out.shape == (B, E) and emb_out.dtype == jnp.float32
    assert jnp.allclose(lm_out.astype(jnp.float32), lm_ref, atol=2e-2, rtol=2e-2)
    assert jnp.allclose(emb_out, emb_ref, atol=5e-3, rtol=5e-3)

    print("KERNEL_OK")
</pallas_src>

<mosaic_0001>
module attributes {stable_mosaic.version = 11 : i64} {
  func.func @_lm_head_kernel(%arg0: i32, %arg1: i32, %arg2: i32, %arg3: memref<16x32xbf16, #tpu.memory_space<vmem>>, %arg4: memref<32x128xbf16, #tpu.memory_space<vmem>>, %arg5: memref<1x128xf32, #tpu.memory_space<vmem>>, %arg6: memref<16x128xbf16, #tpu.memory_space<vmem>>, %arg7: memref<16x128xf32, #tpu.memory_space<vmem>>) attributes {dimension_semantics = [#tpu.dimension_semantics<parallel>, #tpu.dimension_semantics<parallel>, #tpu.dimension_semantics<arbitrary>], iteration_bounds = array<i64: 1, 1, 1>, scalar_prefetch = 0 : i64, scratch_operands = 1 : i64, tpu.core_type = #tpu.core_type<tc>, window_params = [{transform_indices = @transform_0, window_bounds = array<i64: 16, 32>}, {transform_indices = @transform_1, window_bounds = array<i64: 32, 128>}, {transform_indices = @transform_2, window_bounds = array<i64: 1, 128>}, {transform_indices = @transform_3, window_bounds = array<i64: 16, 128>}]} {
    %c0_i32 = arith.constant 0 : i32
    %0 = arith.cmpi eq, %arg2, %c0_i32 : i32
    %1 = arith.extui %0 : i1 to i32
    %c0_i32_0 = arith.constant 0 : i32
    %2 = arith.cmpi ne, %1, %c0_i32_0 : i32
    scf.if %2 {
      %cst_10 = arith.constant 0.000000e+00 : f32
      %12 = vector.broadcast %cst_10 : f32 to vector<16x128xf32>
      %c0_11 = arith.constant 0 : index
      %c0_12 = arith.constant 0 : index
      %13 = vector.load %arg7[%c0_11, %c0_12] : memref<16x128xf32, #tpu.memory_space<vmem>>, vector<16x128xf32>
      tpu.vector_store %arg7[%c0_11, %c0_12], %12 {strides = array<i32>} : memref<16x128xf32, #tpu.memory_space<vmem>>, vector<16x128xf32>,
    } else {
    }
    %c0 = arith.constant 0 : index
    %c0_1 = arith.constant 0 : index
    %3 = vector.load %arg7[%c0, %c0_1] : memref<16x128xf32, #tpu.memory_space<vmem>>, vector<16x128xf32>
    %c0_2 = arith.constant 0 : index
    %c0_3 = arith.constant 0 : index
    %4 = vector.load %arg3[%c0_2, %c0_3] : memref<16x32xbf16, #tpu.memory_space<vmem>>, vector<16x32xbf16>
    %c0_4 = arith.constant 0 : index
    %c0_5 = arith.constant 0 : index
    %5 = vector.load %arg4[%c0_4, %c0_5] : memref<32x128xbf16, #tpu.memory_space<vmem>>, vector<32x128xbf16>
    %cst = arith.constant dense<0.000000e+00> : vector<16x128xf32>
    %6 = tpu.matmul %4, %5, %cst {dimension_numbers = #tpu.dot_dimension_numbers<[1], [0], [0], [1], [0, 0, 1, 1], [], []>} : vector<16x32xbf16>, vector<32x128xbf16>, vector<16x128xf32> -> vector<16x128xf32>
    %7 = arith.addf %3, %6 : vector<16x128xf32>
    %c0_6 = arith.constant 0 : index
    %c0_7 = arith.constant 0 : index
    %8 = vector.load %arg7[%c0_6, %c0_7] : memref<16x128xf32, #tpu.memory_space<vmem>>, vector<16x128xf32>
    tpu.vector_store %arg7[%c0_6, %c0_7], %7 {strides = array<i32>} : memref<16x128xf32, #tpu.memory_space<vmem>>, vector<16x128xf32>,
    %c0_i32_8 = arith.constant 0 : i32
    %9 = arith.cmpi eq, %arg2, %c0_i32_8 : i32
    %10 = arith.extui %9 : i1 to i32
    %c0_i32_9 = arith.constant 0 : i32
    %11 = arith.cmpi ne, %10, %c0_i32_9 : i32
    scf.if %11 {
      %c0_10 = arith.constant 0 : index
      %c0_11 = arith.constant 0 : index
      %12 = vector.load %arg7[%c0_10, %c0_11] : memref<16x128xf32, #tpu.memory_space<vmem>>, vector<16x128xf32>
      %c0_12 = arith.constant 0 : index
      %c0_13 = arith.constant 0 : index
      %13 = vector.load %arg5[%c0_12, %c0_13] : memref<1x128xf32, #tpu.memory_space<vmem>>, vector<1x128xf32>
      %14 = vector.broadcast %13 : vector<1x128xf32> to vector<16x128xf32>
      %15 = arith.addf %12, %14 : vector<16x128xf32>
      %16 = arith.truncf %15 : vector<16x128xf32> to vector<16x128xbf16>
      %c0_14 = arith.constant 0 : index
      %c0_15 = arith.constant 0 : index
      %17 = vector.load %arg6[%c0_14, %c0_15] : memref<16x128xbf16, #tpu.memory_space<vmem>>, vector<16x128xbf16>
      tpu.vector_store %arg6[%c0_14, %c0_15], %16 {strides = array<i32>} : memref<16x128xbf16, #tpu.memory_space<vmem>>, vector<16x128xbf16>,
    } else {
    }
    return
  }
  func.func @transform_0(%arg0: i32, %arg1: i32, %arg2: i32) -> (i32, i32) {
    %c0_i32 = arith.constant 0 : i32
    return %arg1, %arg2 : i32, i32
  }
  func.func @transform_1(%arg0: i32, %arg1: i32, %arg2: i32) -> (i32, i32) {
    %c0_i32 = arith.constant 0 : i32
    return %arg2, %arg0 : i32, i32
  }
  func.func @transform_2(%arg0: i32, %arg1: i32, %arg2: i32) -> (i32, i32) {
    %c0_i32 = arith.constant 0 : i32
    %c0_i32_0 = arith.constant 0 : i32
    return %c0_i32, %arg0 : i32, i32
  }
  func.func @transform_3(%arg0: i32, %arg1: i32, %arg2: i32) -> (i32, i32) {
    %c0_i32 = arith.constant 0 : i32
    return %arg1, %arg0 : i32, i32
  }
}

</mosaic_0001>

<bundles_post_ra>
// kernel: tpu_custom_call.1
= control target key start
LH: loop header
LB: loop body
LE: loop exit
PB: predicated region body
PF: predicated region fallthrough
CT: control target
= control target key end

     0   :  { %8 = vsyncpa [#allocation4], 0  ;;  %s348_s0 = inlined_call_operand.hbm [shape: bf16[16,32], index: 0, kind: input, shape index: {}]   ;;  %s349_s1 = inlined_call_operand.hbm [shape: bf16[32,128], index: 1, kind: input, shape index: {}]   ;;  %s350_s2 = inlined_call_operand.vmem [shape: f32[1,128], index: 2, kind: input, shape index: {}]   ;;  %s351_s3 = inlined_call_operand.hbm [shape: bf16[16,128], index: 3, kind: output, shape index: {}]  }
   0x1   :  { %9 = vsyncpa [#allocation7], 0 }
   0x2   :  { %10 = vsyncpa [#allocation5], 0  ;;  %s273_s12 = smov [#allocation3]   ;;  %s201_s16 = scalar_lea.hbm %s348_s0, 128 }
   0x3   :  { %s16_s13 = sshll.u32 %s273_s12, 4  ;;  %p202_p0 = scmp.ne.s32.totalorder %s348_s0, %s201_s16  ;;  %s17_s13 = int_to_ptr.vmem [resolvable:$true] %s16_s13 }
   0x4   :  { %p205_p1 = scmp.lt.u32.totalorder %s201_s16, %s348_s0 }
   0x6   :  { %p207_p2 = pnand %p205_p1, %p202_p0 }
   0x8   :  { %210 = shalt.err (!%p207_p2)
}
   0x9   :  { %s211_s21 = scalar_lea.vmem %s17_s13, 128  ;;  %p216_p4 = scmp.lt.s32.totalorder %s17_s13, %s17_s13 }
   0xa   :  { %p212_p3 = scmp.ne.s32.totalorder %s17_s13, %s211_s21  ;;  %p217_p5 = scmp.lt.s32.totalorder %s211_s21, %s211_s21 }
   0xc   :  { %p218_p6 = por %p217_p5, %p216_p4 }
   0xe   :  { %p219_p7 = pnand %p218_p6, %p212_p3 }
  0x10   :  { %222 = shalt.err (!%p219_p7)
}
  0x11   :  { %s274_s22 = smov 64   ;;  %s275_s23 = smov 4  }
  0x12   :  { %22 = dma.hbm_to_vmem [thread:$0]  %s348_s0, 128, %s17_s13, [#allocation4], %s274_s22, %s274_s22, %s275_s23  }
  0x13   :  { %s276_s26 = smov [#allocation6]   ;;  %s223_s30 = scalar_lea.hbm %s349_s1, 256 }
  0x14   :  { %s28_s27 = sshll.u32 %s276_s26, 4  ;;  %p224_p8 = scmp.ne.s32.totalorder %s349_s1, %s223_s30  ;;  %s29_s27 = int_to_ptr.vmem [resolvable:$true] %s28_s27 }
  0x15   :  { %p227_p9 = scmp.lt.u32.totalorder %s223_s30, %s349_s1 }
  0x17   :  { %p229_p10 = pnand %p227_p9, %p224_p8 }
  0x19   :  { %232 = shalt.err (!%p229_p10)
}
  0x1a   :  { %s233_s8 = scalar_lea.vmem %s29_s27, 256  ;;  %p238_p12 = scmp.lt.s32.totalorder %s29_s27, %s29_s27 }
  0x1b   :  { %p234_p11 = scmp.ne.s32.totalorder %s29_s27, %s233_s8  ;;  %p239_p13 = scmp.lt.s32.totalorder %s233_s8, %s233_s8 }
  0x1d   :  { %p240_p0 = por %p239_p13, %p238_p12 }
  0x1f   :  { %p241_p1 = pnand %p240_p0, %p234_p11 }
  0x21   :  { %244 = shalt.err (!%p241_p1)
}
  0x22   :  { %34 = dma.hbm_to_vmem [thread:$0]  %s349_s1, 256, %s29_s27, [#allocation7], %s274_s22, %s274_s22, %s275_s23  }
  0x23   :  { %267 = dma.done.wait [#allocation4], 128  }
  0x24   :  { %268 = vsyncadd [#allocation4], 4294967168 }
  0x25   :  { %269 = dma.done.wait [#allocation7], 256  }
  0x26   :  { %270 = vsyncadd [#allocation7], 4294967040  ;;  %v277_v0 = vmov 0.0   ;;  %vm278_vm0 = vmmov 0   ;;  %v198_v1 = vld [vmem:[#allocation6] sm:$0xff]   ;;  %v199_v2 = vld [vmem:[#allocation6 + $0x8] sm:$0xff]  }
  0x27   :  { %183 = vmatprep.subr.bf16.mxu0 %v277_v0  ;;  %187 = vmatprep.mubr.msk.bf16.mxu0 %vm278_vm0, %v277_v0  ;;  %v200_v3 = vld [vmem:[#allocation3] sm:$0xff]   ;;  %vm75_vm1 = vcmask 261120   ;;  %s279_s1 = smov [#allocation8]  }
  0x28   :  { %184 = vmatpush3.bf16.msra.mxu0 %v198_v1  ;;  %v170_v5 = vld [vmem:[%s350_s2] ss:$0 sm:$0xff]  ;;  %s153_s12 = sshll.u32 %s279_s1, 4  ;;  %s154_s12 = int_to_ptr.vmem [resolvable:$true] %s153_s12 }
  0x29   :  { %185 = vmatprep.subr.bf16.mxu0 %v277_v0  ;;  %s245_s13 = scalar_lea.vmem %s154_s12, 128  ;;  %p250_p3 = scmp.lt.s32.totalorder %s154_s12, %s154_s12 }
  0x2a   :  { %p246_p2 = scmp.ne.s32.totalorder %s154_s12, %s245_s13  ;;  %p251_p4 = scmp.lt.s32.totalorder %s245_s13, %s245_s13 }
  0x2c   :  { %186 = vmatpush3.bf16.msra.mxu0 %v199_v2  ;;  %p252_p5 = por %p251_p4, %p250_p3 }
  0x2e   :  { %p253_p6 = pnand %p252_p5, %p246_p2 }
  0x2f   :  { %188 = vmatmul.mubr.msk.bf16.vlgmr.msra.gmra.mrb[0].mxu0 %vm75_vm1, %v200_v3 }
 0x102   :  { %v113_v4 = vpop.f32.mrb[0].mxu0 }
 0x103   :  { %v189_v6 = vpop.f32.mrb[1].mxu0  ;;  %v136_v8 = vadd.f32 %v170_v5, %v113_v4 }
 0x104   :  { %v116_v7 = vpop.f32.mrb[2].mxu0 }
 0x105   :  { %v137_v9 = vadd.f32 %v170_v5, %v116_v7  ;;  %v190_v10 = vpop.f32.mrb[3].mxu0 }
 0x107   :  { %v178_v11 = vpack.c.bf16 %v137_v9, %v136_v8 }
 0x109   :  { %179 = vst [vmem:[#allocation8] sm:$0xff] %v178_v11  }
 0x10a   :  { %256 = shalt.err (!%p253_p6)
}
 0x10b   :  { %s257_s2 = scalar_lea.hbm %s351_s3, 128 }
 0x10c   :  { %p258_p7 = scmp.ne.s32.totalorder %s351_s3, %s257_s2  ;;  %p261_p8 = scmp.lt.u32.totalorder %s257_s2, %s351_s3 }
 0x10e   :  { %p263_p9 = pnand %p261_p8, %p258_p7 }
 0x110   :  { %266 = shalt.err (!%p263_p9)
}
 0x111   :  { %159 = dma.vmem_to_hbm [thread:$0]  %s154_s12, 128, %s351_s3, [#allocation5], %s274_s22, %s274_s22, %s275_s23  }
 0x112   :  { %271 = dma.done.wait [#allocation5], 128  }
 0x113   :  { %272 = vsyncadd [#allocation5], 4294967168 }
 0x114   :  { %163 = vsyncpa [#allocation4], 1 }
 0x115   :  { %164 = vsyncpa [#allocation7], 1 }
 0x116   :  { %165 = vsyncpa [#allocation5], 1 }

</bundles_post_ra>
